<compile_context>
chip_gen: v7x
topology: tpu7x:2x2x1
jax: 0.10.0
libtpu: 0.0.40
codegen_flags: <defaults>
</compile_context>

<pallas_src>
import functools
import math

import jax
import jax.numpy as jnp
import numpy as np
from jax.experimental import pallas as pl
from jax.experimental.pallas import tpu as pltpu


def _round_up(x: int, m: int) -> int:
    return ((x + m - 1) // m) * m


def _default_vmem_limit_bytes() -> int:
    # ~80% of physical VMEM: ~100 MiB on v5e/v6e (128 MiB), ~51 MiB on v7x (64 MiB).
    try:
        cap = int(pltpu.get_tpu_info().vmem_capacity_bytes)
        return int(cap * 0.8)
    except Exception:
        # Conservative fallback: >= default scoped limit on every chip,
        # <= physical VMEM on every chip.
        return 64 * 1024 * 1024


# ---------------------------------------------------------------------------
# Pallas kernel: grouped (expert-sorted) fused SwiGLU expert MLP with an
# inner reduction over I-chunks.
#   grid = (n_tiles, n_i_chunks)   tiles: "parallel", I-chunks: "arbitrary"
# ---------------------------------------------------------------------------
def _grouped_mlp_kernel(tile_expert_ref,  # SMEM prefetch (n_tiles,) int32 (index_maps only)
                        x_ref,            # (tm, H)      sorted/padded token rows
                        wgu_ref,          # (1, H, 2*tI) fused gate|up chunk of this tile's expert
                        wd_ref,           # (1, tI, H)   down_proj chunk
                        rw_ref,           # (tm, 1)      f32 routing weights (0 for padding rows)
                        o_ref,            # (tm, H)      weighted expert output
                        acc_ref,          # (tm, H)      f32 accumulator scratch
                        *, block_i: int):
    del tile_expert_ref
    k = pl.program_id(1)

    @pl.when(k == 0)
    def _init():
        acc_ref[...] = jnp.zeros_like(acc_ref)

    x = x_ref[...]
    wgu = wgu_ref[0]                                   # (H, 2*tI)
    # Single fused matmul for gate+up; f32 MXU accumulation.
    h = jnp.dot(x, wgu, preferred_element_type=jnp.float32)
    h_gate = h[:, :block_i]
    h_up = h[:, block_i:]
    # SwiGLU in f32 (sigmoid goes to the EUP slot, essentially free).
    act = (h_gate * jax.nn.sigmoid(h_gate)) * h_up
    # Partial down projection, accumulate in f32.
    acc_ref[...] += jnp.dot(act.astype(wd_ref.dtype), wd_ref[0],
                            preferred_element_type=jnp.float32)

    @pl.when(k == pl.num_programs(1) - 1)
    def _store():
        rw = rw_ref[...]                               # (tm, 1) f32, 0 for padding rows
        # Mask padding rows explicitly so 0 * (inf/NaN) cannot contaminate token 0.
        out = jnp.where(rw > 0.0, acc_ref[...] * rw, 0.0)
        o_ref[...] = out.astype(o_ref.dtype)           # single lane-dense store


# ---------------------------------------------------------------------------
# Wrapper: routing (XLA) + grouped expert MLP (Pallas) + scatter-add (XLA).
# ---------------------------------------------------------------------------
def qwen3_moe_block(hidden_states,      # (B, S, H)
                    gate_w,             # (H, E)
                    w_gate_proj,        # (E, H, I)
                    w_up_proj,          # (E, H, I)
                    w_down_proj,        # (E, I, H)
                    *,
                    top_k: int,
                    norm_topk_prob: bool = True,
                    block_tokens: int = 256,   # v6e/v7x: 256(+); v5e: 128
                    block_i: int | None = None,  # None = whole I (best weight reuse);
                                                 # set (e.g. 512) on v7x / huge experts
                    vmem_limit_bytes: int | None = None):
    B, S, H = hidden_states.shape
    E, H2, I = w_gate_proj.shape
    assert H2 == H
    T = B * S
    x = hidden_states.reshape(T, H)

    tm = block_tokens
    tI = I if (block_i is None or block_i >= I) else block_i
    assert I % tI == 0, "block_i must divide the intermediate size"
    n_ic = I // tI

    # ---- Router: logits, f32 softmax, top-k, optional renorm (XLA) --------
    router_logits = jnp.dot(x, gate_w)                              # (T, E)
    probs = jax.nn.softmax(router_logits.astype(jnp.float32), axis=-1)
    top_w, top_e = jax.lax.top_k(probs, top_k)                      # (T, k)
    if norm_topk_prob:
        top_w = top_w / jnp.sum(top_w, axis=-1, keepdims=True)
    top_w = top_w.astype(jnp.float32)

    # ---- Sort (token, slot) pairs by expert; pad groups to tile multiples --
    n_rows = T * top_k
    flat_e = top_e.reshape(-1).astype(jnp.int32)                    # (T*k,)
    flat_t = jnp.repeat(jnp.arange(T, dtype=jnp.int32), top_k)      # (T*k,)
    flat_w = top_w.reshape(-1)                                      # (T*k,) f32

    order = jnp.argsort(flat_e)                                     # stable
    sort_e = flat_e[order]
    sort_t = flat_t[order]
    sort_w = flat_w[order]

    counts = jnp.bincount(flat_e, length=E)                         # (E,)
    starts = jnp.cumsum(counts) - counts                            # unpadded starts
    pad_counts = ((counts + tm - 1) // tm) * tm                     # round up to tm
    pad_starts = jnp.cumsum(pad_counts) - pad_counts
    pad_ends = jnp.cumsum(pad_counts)

    # Destination row of each sorted (token, slot) pair in the padded layout.
    rank = jnp.arange(n_rows, dtype=jnp.int32) - starts[sort_e]
    dest = pad_starts[sort_e] + rank

    # Static worst-case padded size: every expert wastes at most tm-1 rows.
    P = _round_up(n_rows + E * (tm - 1), tm)
    n_tiles = P // tm

    token_pad = jnp.zeros((P,), jnp.int32).at[dest].set(sort_t)     # token id per row
    w_pad = jnp.zeros((P,), jnp.float32).at[dest].set(sort_w)       # 0 for padding rows

    # Expert id owning each token tile (tail tiles clamp to E-1; their rows
    # all have weight 0 and are masked in the kernel epilogue).
    tile_start = jnp.arange(n_tiles, dtype=jnp.int32) * tm
    tile_expert = jnp.minimum(
        jnp.searchsorted(pad_ends, tile_start, side="right"), E - 1
    ).astype(jnp.int32)

    # Gather the sorted/padded token activations.
    # TODO(synk): replace this XLA gather with an in-kernel row gather
    # (scalar-prefetched token ids + pl.Element / make_async_copy) to save one
    # full (P, H) HBM read+write at large-T prefill.
    x_sorted = x[token_pad]                                         # (P, H)
    rw_sorted = w_pad[:, None]                                      # (P, 1) f32

    # Fused, chunk-interleaved gate|up weight: chunk k of the last axis is
    # [gate cols k*tI:(k+1)*tI | up cols k*tI:(k+1)*tI].
    # (In production this re-layout is a one-time weight preprocessing step.)
    w_gu = jnp.concatenate(
        [w_gate_proj.reshape(E, H, n_ic, tI), w_up_proj.reshape(E, H, n_ic, tI)],
        axis=-1,
    ).reshape(E, H, 2 * I)

    if vmem_limit_bytes is None:
        vmem_limit_bytes = _default_vmem_limit_bytes()

    # Advisory cost estimate so XLA can overlap router/sort/gather/scatter
    # with the Pallas call.
    x_bytes = jnp.dtype(x.dtype).itemsize
    w_bytes = jnp.dtype(w_gu.dtype).itemsize
    cost = pl.CostEstimate(
        flops=6 * P * H * I,
        transcendentals=P * I,
        bytes_accessed=int(2 * P * H * x_bytes + P * 4
                           + n_tiles * 3 * H * I * w_bytes),
    )

    kernel = functools.partial(_grouped_mlp_kernel, block_i=tI)

    out_sorted = pl.pallas_call(
        kernel,
        out_shape=jax.ShapeDtypeStruct((P, H), x.dtype),
        grid_spec=pltpu.PrefetchScalarGridSpec(
            num_scalar_prefetch=1,
            grid=(n_tiles, n_ic),
            in_specs=[
                # x tile: resident across the I-chunk axis (same block index).
                pl.BlockSpec((tm, H), lambda i, k, te: (i, 0)),
                # fused gate|up chunk of this tile's expert.
                pl.BlockSpec((1, H, 2 * tI), lambda i, k, te: (te[i], 0, k)),
                # down_proj chunk of this tile's expert.
                pl.BlockSpec((1, tI, H), lambda i, k, te: (te[i], k, 0)),
                # routing weights (epilogue only).
                pl.BlockSpec((tm, 1), lambda i, k, te: (i, 0)),
            ],
            out_specs=pl.BlockSpec((tm, H), lambda i, k, te: (i, 0)),
            scratch_shapes=[pltpu.VMEM((tm, H), jnp.float32)],
        ),
        compiler_params=pltpu.CompilerParams(
            # Token-tile axis is independent ("parallel", v7x megacore split);
            # I-chunk axis is a reduction ("arbitrary").
            # TODO(synk): verify the megacore split hands each TensorCore a
            # contiguous range of expert-sorted tiles; otherwise use an
            # explicit leading core axis to preserve cross-tile weight reuse.
            dimension_semantics=("parallel", "arbitrary"),
            vmem_limit_bytes=int(vmem_limit_bytes),
        ),
        cost_estimate=cost,
    )(tile_expert, x_sorted, w_gu, w_down_proj, rw_sorted)

    # Scatter-add weighted expert outputs back to token positions.  Padding
    # rows are exact zeros (masked in-kernel) and land on token 0 harmlessly.
    final = jnp.zeros((T, H), x.dtype).at[token_pad].add(out_sorted)
    final = final.reshape(B, S, H)
    return final, router_logits


# ---------------------------------------------------------------------------
# Pure-JAX reference (dense-per-expert formulation, mathematically identical
# to the PyTorch per-expert index_add_ loop).
# ---------------------------------------------------------------------------
def _reference_moe(hidden_states, gate_w, w_gate_proj, w_up_proj, w_down_proj,
                   top_k, norm_topk_prob):
    B, S, H = hidden_states.shape
    x = hidden_states.reshape(-1, H)
    E = w_gate_proj.shape[0]

    logits = jnp.dot(x, gate_w)
    probs = jax.nn.softmax(logits.astype(jnp.float32), axis=-1)
    top_w, top_e = jax.lax.top_k(probs, top_k)
    if norm_topk_prob:
        top_w = top_w / jnp.sum(top_w, axis=-1, keepdims=True)
    top_w = top_w.astype(x.dtype)

    out = jnp.zeros_like(x)
    for e in range(E):
        h1 = x @ w_gate_proj[e]
        h2 = x @ w_up_proj[e]
        o = (jax.nn.silu(h1) * h2) @ w_down_proj[e]
        w_e = jnp.sum(jnp.where(top_e == e, top_w, 0.0), axis=-1)   # (T,)
        out = out + o * w_e[:, None]
    return out.reshape(B, S, H), logits


if __name__ == "__main__":
    # Small, MXU-friendly demo shapes (H, I multiples of 128 for lane density).
    # block_i=128 -> 2 I-chunks, exercising the reduction axis / accumulator.
    B, S, H, I, E, TOPK = 2, 8, 128, 256, 8, 2
    dtype = jnp.float32

    key = jax.random.PRNGKey(0)
    k1, k2, k3, k4, k5 = jax.random.split(key, 5)
    x = jax.random.normal(k1, (B, S, H), dtype)
    gate_w = (jax.random.normal(k2, (H, E), dtype) / math.sqrt(H)).astype(dtype)
    w_gate = (jax.random.normal(k3, (E, H, I), dtype) / math.sqrt(H)).astype(dtype)
    w_up = (jax.random.normal(k4, (E, H, I), dtype) / math.sqrt(H)).astype(dtype)
    w_down = (jax.random.normal(k5, (E, I, H), dtype) / math.sqrt(I)).astype(dtype)

    fwd = jax.jit(functools.partial(qwen3_moe_block, top_k=TOPK,
                                    norm_topk_prob=True,
                                    block_tokens=8, block_i=128))
    out, logits = fwd(x, gate_w, w_gate, w_up, w_down)
    out = jax.block_until_ready(out)
    logits = jax.block_until_ready(logits)

    assert out.shape == (B, S, H)
    assert logits.shape == (B * S, E)

    ref_out, ref_logits = _reference_moe(x, gate_w, w_gate, w_up, w_down,
                                         TOPK, True)
    np.testing.assert_allclose(np.asarray(logits), np.asarray(ref_logits),
                               atol=1e-3, rtol=1e-3)
    np.testing.assert_allclose(np.asarray(out), np.asarray(ref_out),
                               atol=5e-2, rtol=5e-2)

    print("KERNEL_OK")
</pallas_src>

<mosaic_0001>
module attributes {stable_mosaic.version = 11 : i64} {
  func.func private @main(%arg0: i32) attributes {dimension_semantics = [#tpu.dimension_semantics<core_parallel>], iteration_bounds = array<i64: 2>, tpu.core_type = #tpu.core_type<sc_scalar_subcore>, window_params = []} {
    return
  }
}

module attributes {stable_mosaic.version = 11 : i64} {
  func.func private @main(%arg0: i32) attributes {dimension_semantics = [#tpu.dimension_semantics<core_parallel>], iteration_bounds = array<i64: 2>, tpu.core_type = #tpu.core_type<sc_scalar_subcore>, window_params = []} {
    return
  }
}

module attributes {stable_mosaic.version = 11 : i64} {
  func.func @_grouped_mlp_kernel(%arg0: i32, %arg1: i32, %arg2: memref<11xi32, #tpu.memory_space<smem>>, %arg3: memref<8x128xf32, #tpu.memory_space<vmem>>, %arg4: memref<1x128x256xf32, #tpu.memory_space<vmem>>, %arg5: memref<1x128x128xf32, #tpu.memory_space<vmem>>, %arg6: memref<8x1xf32, #tpu.memory_space<vmem>>, %arg7: memref<8x128xf32, #tpu.memory_space<vmem>>, %arg8: memref<8x128xf32, #tpu.memory_space<vmem>>) attributes {dimension_semantics = [#tpu.dimension_semantics<parallel>, #tpu.dimension_semantics<arbitrary>], iteration_bounds = array<i64: 11, 2>, scalar_prefetch = 1 : i64, scratch_operands = 1 : i64, tpu.core_type = #tpu.core_type<tc>, window_params = [{transform_indices = @transform_0, window_bounds = array<i64: 8, 128>}, {transform_indices = @transform_1, window_bounds = array<i64: 1, 128, 256>}, {transform_indices = @transform_2, window_bounds = array<i64: 1, 128, 128>}, {transform_indices = @transform_3, window_bounds = array<i64: 8, 1>}, {transform_indices = @transform_4, window_bounds = array<i64: 8, 128>}]} {
    %c0_i32 = arith.constant 0 : i32
    %0 = arith.cmpi eq, %arg1, %c0_i32 : i32
    %1 = arith.extui %0 : i1 to i32
    %c0_i32_0 = arith.constant 0 : i32
    %2 = arith.cmpi ne, %1, %c0_i32_0 : i32
    scf.if %2 {
      %cst_15 = arith.constant 0.000000e+00 : f32
      %25 = vector.broadcast %cst_15 : f32 to vector<8x128xf32>
      %c0_16 = arith.constant 0 : index
      %c0_17 = arith.constant 0 : index
      %26 = vector.load %arg8[%c0_16, %c0_17] : memref<8x128xf32, #tpu.memory_space<vmem>>, vector<8x128xf32>
      tpu.vector_store %arg8[%c0_16, %c0_17], %25 {strides = array<i32>} : memref<8x128xf32, #tpu.memory_space<vmem>>, vector<8x128xf32>,
    } else {
    }
    %c0 = arith.constant 0 : index
    %c0_1 = arith.constant 0 : index
    %3 = vector.load %arg3[%c0, %c0_1] : memref<8x128xf32, #tpu.memory_space<vmem>>, vector<8x128xf32>
    %c0_2 = arith.constant 0 : index
    %c0_3 = arith.constant 0 : index
    %c0_4 = arith.constant 0 : index
    %4 = vector.load %arg4[%c0_2, %c0_3, %c0_4] : memref<1x128x256xf32, #tpu.memory_space<vmem>>, vector<1x128x256xf32>
    %5 = vector.shape_cast %4 : vector<1x128x256xf32> to vector<128x256xf32>
    %cst = arith.constant dense<0.000000e+00> : vector<8x256xf32>
    %6 = tpu.matmul %3, %5, %cst {dimension_numbers = #tpu.dot_dimension_numbers<[1], [0], [0], [1], [0, 0, 1, 1], [], []>} : vector<8x128xf32>, vector<128x256xf32>, vector<8x256xf32> -> vector<8x256xf32>
    %7 = vector.extract_strided_slice %6 {offsets = [0, 0], sizes = [8, 128], strides = [1, 1]} : vector<8x256xf32> to vector<8x128xf32>
    %8 = vector.extract_strided_slice %6 {offsets = [0, 128], sizes = [8, 128], strides = [1, 1]} : vector<8x256xf32> to vector<8x128xf32>
    %9 = arith.negf %7 : vector<8x128xf32>
    %10 = math.exp %9 : vector<8x128xf32>
    %cst_5 = arith.constant 1.000000e+00 : f32
    %11 = vector.broadcast %cst_5 : f32 to vector<8x128xf32>
    %12 = arith.addf %11, %10 : vector<8x128xf32>
    %13 = arith.divf %11, %12 : vector<8x128xf32>
    %14 = arith.mulf %7, %13 : vector<8x128xf32>
    %15 = arith.mulf %14, %8 : vector<8x128xf32>
    %c0_6 = arith.constant 0 : index
    %c0_7 = arith.constant 0 : index
    %16 = vector.load %arg8[%c0_6, %c0_7] : memref<8x128xf32, #tpu.memory_space<vmem>>, vector<8x128xf32>
    %c0_8 = arith.constant 0 : index
    %c0_9 = arith.constant 0 : index
    %c0_10 = arith.constant 0 : index
    %17 = vector.load %arg5[%c0_8, %c0_9, %c0_10] : memref<1x128x128xf32, #tpu.memory_space<vmem>>, vector<1x128x128xf32>
    %18 = vector.shape_cast %17 : vector<1x128x128xf32> to vector<128x128xf32>
    %cst_11 = arith.constant dense<0.000000e+00> : vector<8x128xf32>
    %19 = tpu.matmul %15, %18, %cst_11 {dimension_numbers = #tpu.dot_dimension_numbers<[1], [0], [0], [1], [0, 0, 1, 1], [], []>} : vector<8x128xf32>, vector<128x128xf32>, vector<8x128xf32> -> vector<8x128xf32>
    %20 = arith.addf %16, %19 : vector<8x128xf32>
    %c0_12 = arith.constant 0 : index
    %c0_13 = arith.constant 0 : index
    %21 = vector.load %arg8[%c0_12, %c0_13] : memref<8x128xf32, #tpu.memory_space<vmem>>, vector<8x128xf32>
    tpu.vector_store %arg8[%c0_12, %c0_13], %20 {strides = array<i32>} : memref<8x128xf32, #tpu.memory_space<vmem>>, vector<8x128xf32>,
    %c1_i32 = arith.constant 1 : i32
    %22 = arith.cmpi eq, %arg1, %c1_i32 : i32
    %23 = arith.extui %22 : i1 to i32
    %c0_i32_14 = arith.constant 0 : i32
    %24 = arith.cmpi ne, %23, %c0_i32_14 : i32
    scf.if %24 {
      %c0_15 = arith.constant 0 : index
      %c0_16 = arith.constant 0 : index
      %25 = vector.load %arg6[%c0_15, %c0_16] : memref<8x1xf32, #tpu.memory_space<vmem>>, vector<8x1xf32>
      %cst_17 = arith.constant 0.000000e+00 : f32
      %26 = vector.broadcast %cst_17 : f32 to vector<8x1xf32>
      %27 = arith.cmpf ogt, %25, %26 : vector<8x1xf32>
      %c0_18 = arith.constant 0 : index
      %c0_19 = arith.constant 0 : index
      %28 = vector.load %arg8[%c0_18, %c0_19] : memref<8x128xf32, #tpu.memory_space<vmem>>, vector<8x128xf32>
      %29 = vector.broadcast %25 : vector<8x1xf32> to vector<8x128xf32>
      %30 = arith.mulf %28, %29 : vector<8x128xf32>
      %cst_20 = arith.constant 0.000000e+00 : f32
      %31 = vector.shape_cast %27 : vector<8x1xi1> to vector<8x1xi1>
      %32 = vector.broadcast %31 : vector<8x1xi1> to vector<8x128xi1>
      %33 = vector.broadcast %cst_20 : f32 to vector<8x128xf32>
      %34 = arith.select %32, %30, %33 : vector<8x128xi1>, vector<8x128xf32>
      %c0_21 = arith.constant 0 : index
      %c0_22 = arith.constant 0 : index
      %35 = vector.load %arg7[%c0_21, %c0_22] : memref<8x128xf32, #tpu.memory_space<vmem>>, vector<8x128xf32>
      tpu.vector_store %arg7[%c0_21, %c0_22], %34 {strides = array<i32>} : memref<8x128xf32, #tpu.memory_space<vmem>>, vector<8x128xf32>,
    } else {
    }
    return
  }
  func.func @transform_0(%arg0: i32, %arg1: i32, %arg2: memref<11xi32, #tpu.memory_space<smem>>) -> (i32, i32) {
    %c0_i32 = arith.constant 0 : i32
    %c0_i32_0 = arith.constant 0 : i32
    return %arg0, %c0_i32 : i32, i32
  }
  func.func @transform_1(%arg0: i32, %arg1: i32, %arg2: memref<11xi32, #tpu.memory_space<smem>>) -> (i32, i32, i32) {
    %0 = arith.index_cast %arg0 : i32 to index
    %1 = memref.load %arg2[%0] : memref<11xi32, #tpu.memory_space<smem>>
    %c0_i32 = arith.constant 0 : i32
    %c0_i32_0 = arith.constant 0 : i32
    return %1, %c0_i32, %arg1 : i32, i32, i32
  }
  func.func @transform_2(%arg0: i32, %arg1: i32, %arg2: memref<11xi32, #tpu.memory_space<smem>>) -> (i32, i32, i32) {
    %0 = arith.index_cast %arg0 : i32 to index
    %1 = memref.load %arg2[%0] : memref<11xi32, #tpu.memory_space<smem>>
    %c0_i32 = arith.constant 0 : i32
    %c0_i32_0 = arith.constant 0 : i32
    return %1, %arg1, %c0_i32 : i32, i32, i32
  }
  func.func @transform_3(%arg0: i32, %arg1: i32, %arg2: memref<11xi32, #tpu.memory_space<smem>>) -> (i32, i32) {
    %c0_i32 = arith.constant 0 : i32
    %c0_i32_0 = arith.constant 0 : i32
    return %arg0, %c0_i32 : i32, i32
  }
  func.func @transform_4(%arg0: i32, %arg1: i32, %arg2: memref<11xi32, #tpu.memory_space<smem>>) -> (i32, i32) {
    %c0_i32 = arith.constant 0 : i32
    %c0_i32_0 = arith.constant 0 : i32
    return %arg0, %c0_i32 : i32, i32
  }
}

</mosaic_0001>

<bundles_post_ra>
// kernel: custom-call
= control target key start
LH: loop header
LB: loop body
LE: loop exit
PB: predicated region body
PF: predicated region fallthrough
CT: control target
= control target key end

     0   :  { %s6_s0 = inlined_call_operand.vmem [shape: u32[11], index: 0, kind: output, shape index: {}]  }

// kernel: qwen3_moe_block.1
= control target key start
LH: loop header
LB: loop body
LE: loop exit
PB: predicated region body
PF: predicated region fallthrough
CT: control target
= control target key end

     0   :  { %s1943_s0 = inlined_call_operand.hbm [shape: s32[11], index: 0, kind: input, shape index: {}]   ;;  %s1944_s1 = inlined_call_operand.hbm [shape: f32[88,128], index: 1, kind: input, shape index: {}]   ;;  %s1945_s2 = inlined_call_operand.hbm [shape: f32[8,128,512], index: 2, kind: input, shape index: {}]   ;;  %s1946_s3 = inlined_call_operand.hbm [shape: f32[8,256,128], index: 3, kind: input, shape index: {}]   ;;  %s1947_s4 = inlined_call_operand.hbm [shape: f32[88,1], index: 4, kind: input, shape index: {}]   ;;  %s1948_s5 = inlined_call_operand.hbm [shape: f32[88,128], index: 5, kind: output, shape index: {}]  }
   0x1   :  { %1972 = sst [smem:[#allocation39_spill]] %s1944_s1  ;;  %s1057_s20 = scalar_lea.hbm %s1943_s0, 16 }
   0x2   :  { %1973 = sst [smem:[#allocation40_spill]] %s1945_s2  ;;  %p1058_p0 = scmp.ne.s32.totalorder %s1943_s0, %s1057_s20 }
   0x3   :  { %1974 = sst [smem:[#allocation41_spill]] %s1946_s3  ;;  %p1061_p1 = scmp.lt.u32.totalorder %s1057_s20, %s1943_s0 }
   0x4   :  { %1975 = sst [smem:[#allocation42_spill]] %s1947_s4 }
   0x5   :  { %1976 = sst [smem:[#allocation43_spill]] %s1948_s5  ;;  %p1063_p2 = pnand %p1061_p1, %p1058_p0 }
   0x7   :  { %1066 = shalt.err (!%p1063_p2)  }
   0x8   :  { %s1349_s25 = smov [#allocation4]  }
   0x9   :  { %11 = dma.hbm_to_smem %s1943_s0, 16, %s1349_s25, [#allocation3] }
   0xa   :  { %1271 = dma.done.wait [#allocation3], 16 }
   0xb   :  { %1272 = vsyncadd [#allocation3], 4294967280 }
   0xc   :  { %13 = sfence }
   0xd   :  { %14 = vsyncpa [#allocation6], 0 }
   0xe   :  { %16 = vsyncpa [#allocation6 + $0x1], 0 }
   0xf   :  { %17 = vsyncpa [#allocation9], 0 }
  0x10   :  { %19 = vsyncpa [#allocation9 + $0x1], 0 }
  0x11   :  { %20 = vsyncpa [#allocation12], 0 }
  0x12   :  { %22 = vsyncpa [#allocation12 + $0x1], 0 }
  0x13   :  { %23 = vsyncpa [#allocation7], 0 }
  0x14   :  { %25 = vsyncpa [#allocation7 + $0x1], 0  ;;  %s1407_s28 = smov 0   ;;  %s1409_s29 = smov 0  }
  0x15   :  { %s1411_s30 = smov 0   ;;  %s1413_s6 = smov 0  }
  0x16   :  { %s1415_s0 = smov 0   ;;  %s1417_s7 = smov 0  }
  0x17   :  { %s1419_s8 = smov 0   ;;  %s1421_s9 = smov 0  }
  0x18   :  { %s1423_s10 = smov 0   ;;  %s1425_s11 = smov 0  }
  0x19   :  { %s1427_s12 = smov 0   ;;  %s1429_s13 = smov 0  }
  0x1a   :  { %s1431_s14 = smov 0   ;;  %s1433_s15 = smov 0  }
  0x1b LB: > { %1977 = sst [smem:[#allocation24_spill]] %s1295_s28  ;;  %s40_s16 = sadd.s32 1, %s1339_s13  ;;  %s1347_s15 = sphi %s1433_s15, %s31_s15   ;;  %s1343_s14 = sphi %s1431_s14, %s2056_s14   ;;  %s1339_s13 = sphi %s1429_s13, %s2055_s13   ;;  %s1335_s12 = sphi %s1427_s12, %s2054_s12   ;;  %s1331_s11 = sphi %s1425_s11, %s2045_s11   ;;  %s1327_s10 = sphi %s1423_s10, %s2044_s10   ;;  %s1323_s9 = sphi %s1421_s9, %s2053_s9   ;;  %s1319_s8 = sphi %s1419_s8, %s2052_s8   ;;  %s1315_s7 = sphi %s1417_s7, %s2042_s7   ;;  %s1311_s0 = sphi %s1415_s0, %s2051_s0   ;;  %s1307_s6 = sphi %s1413_s6, %s2050_s6   ;;  %s1303_s30 = sphi %s1411_s30, %s2040_s30   ;;  %s1299_s29 = sphi %s1409_s29, %s2039_s29   ;;  %s1295_s28 = sphi %s1407_s28, %s2049_s28  }
  0x1c   : > { %1978 = sst [smem:[#allocation25_spill]] %s1299_s29  ;;  %s43_s17 = sadd.s32 1, %s1343_s14 }
  0x1d   : > { %1979 = sst [smem:[#allocation26_spill]] %s1303_s30  ;;  %p41_p3 = scmp.ge.s32.totalorder %s40_s16, 2 }
  0x1e   : > { %1980 = sst [smem:[#allocation27_spill]] %s1315_s7  ;;  %p1958_p4 = scmp.eq.s32.totalorder %s1347_s15, 0 }
  0x1f   : > { %1981 = sst [smem:[#allocation28_spill]] %s1319_s8  ;;  %s80_s19 = sadd.s32 1, %s1315_s7 }
  0x20   : > { %1982 = sst [smem:[#allocation29_spill]] %s1327_s10  ;;  %s2058_s16 = smov (%p41_p3, %s40_s16), 0 }
  0x21   : > { %1983 = sst [smem:[#allocation30_spill]] %s1331_s11  ;;  %s2060_s17 = smov (!%p41_p3, %s43_s17), %s1343_s14 }
  0x22   : > { %1984 = sst [smem:[#allocation31_spill]] %s1335_s12  ;;  %s76_s20 = ssub.s32 %s1339_s13, %s2058_s16 }
  0x23   : > { %1985 = sst [smem:[#allocation32_spill]] %s1339_s13  ;;  %p87_p5 = scmp.ne.s32.totalorder %s1315_s7, %s1311_s0 }
  0x24   : > { %s73_s18 = sld [smem:[#allocation4 + %s1343_s14]]  ;;  %p45_p6 = scmp.ge.s32.totalorder %s2060_s17, 11 }
  0x25   : > { %1986 = sst [smem:[#allocation33_spill]] %s2058_s16  ;;  %p1493_p8 = por %p87_p5, %p1958_p4 }
  0x26   : > { %s103_s22 = sld [smem:[#allocation4 + %s1343_s14]]  ;;  %s2062_s17 = smov (%p45_p6, %s2060_s17), 0 }
  0x27   : > { %1988 = sst [smem:[#allocation34_spill]] %s2062_s17  ;;  %p1957_p9 = scmp.lt.s32.totalorder %s1347_s15, 22 }
  0x28   : > { %s74_s23 = sld [smem:[#allocation4 + %s2062_s17]]  ;;  %s217_s25 = sand.u32 1, %s1347_s15  }
  0x29   : > { %s104_s24 = sld [smem:[#allocation4 + %s2062_s17]]  ;;  %s219_s26 = sand.u32 1, %s1315_s7  }
  0x2a   : > { %s761_s27 = sshll.u32 %s219_s26, 8  ;;  %s762_s16 = sshll.u32 %s1339_s13, 1 }
  0x2b   : > { %s893_s5 = scalar_select %p1493_p8, [#allocation4], [#allocation14] }
  0x2c   : > { %s894_s12 = scalar_select %p1493_p8, %s1343_s14, 0 }
  0x2d   : > { %s2064_s5 = smov (!%p1957_p9, %s893_s5), [#allocation16]  ;;  %s221_s26 = scalar_lea.vmem [#allocation8], %s761_s27 }
  0x2e   : > { %s75_s11 = ssub.s32 %s73_s18, %s74_s23  ;;  %s2066_s12 = smov (!%p1957_p9, %s894_s12), 0 }
  0x2f   : > { %s105_s3 = ssub.s32 %s103_s22, %s104_s24  ;;  %s77_s4 = sor.u32 %s76_s20, %s75_s11 }
  0x30   : > { %s1511_s28 = sor.u32 %s105_s3, %s76_s20  ;;  %p78_p10 = scmp.eq.s32.totalorder %s77_s4, 0 }
  0x31   : > { %s231_s13 = sshll.u32 %s221_s26, 4  ;;  %p1525_p12 = pnand %p1957_p9, %p1493_p8  ;;  %s1529_s13 = int_to_ptr.vmem [resolvable:$true] %s231_s13 }
  0x32   : > { %s1517_s29 = scalar_select %p78_p10, %s1315_s7, %s80_s19  }
  0x33   : > { %s222_s3 = sld [smem:[%s2064_s5 + %s2066_s12]]  ;;  %p771_p13 = scmp.ge.s32.totalorder %s1347_s15, 1 }
  0x34   : > { %1989 = sst [smem:[#allocation35_spill]] %s1517_s29  ;;  %p281_p0 = scmp.lt.s32.totalorder %s1347_s15, 23 }
  0x35   : > { %s1992_s2 = sld [smem:[#allocation40_spill]]  ;;  %s1542_s5 = scalar_lea.sflag [#allocation9], %s217_s25 }
  0x36   : > { %p1533_p1 = pnand %p771_p13, %p281_p0  ;;  %p1069_p3 = pneg %p1525_p12 }
  0x38   : > { %s1991_s4 = scalar_select %p1533_p1, 1, 0 }
  0x39   : > { %s763_s11 = sshll.u32 %s222_s3, 6 }
  0x3a   : > { %s228_s18 = sadd.s32 %s763_s11, %s762_s16 }
  0x3b   : > { %s764_s19 = sshll.u32 %s228_s18, 7  ;;  %s1072_s24 = scalar_lea.hbm %s1992_s2, 65536 }
  0x3c   : > { %s1540_s22 = scalar_lea.hbm %s1992_s2, %s764_s19 }
  0x3d   : > { %s1067_s12 = scalar_lea.hbm %s1540_s22, 4096  ;;  %p1073_p8 = scmp.lt.u32.totalorder %s1540_s22, %s1992_s2 }
  0x3e   : > { %p1068_p2 = scmp.ne.s32.totalorder %s1540_s22, %s1067_s12  ;;  %p1074_p10 = scmp.lt.u32.totalorder %s1072_s24, %s1067_s12 }
  0x3f   : > { %p1076_p0 = scmp.lt.u32.totalorder %s1067_s12, %s1540_s22 }
  0x40   : > { %p1070_p5 = pnand %p1069_p3, %p1068_p2  ;;  %p1075_p13 = por %p1074_p10, %p1073_p8 }
  0x42   : > { %p1071_p6 = pneg %p1070_p5  ;;  %p1077_p11 = por %p1076_p0, %p1075_p13 }
  0x44   : > { %p1078_p9 = pnand %p1077_p11, %p1071_p6 }
  0x46   : > { %1081 = shalt.err (!%p1078_p9)
}
  0x47   : > { %s1082_s25 = scalar_lea.vmem %s1529_s13, 4096  ;;  %s1350_s3 = smov [#allocation8]  }
  0x48   : > { %p1083_p2 = scmp.ne.s32.totalorder %s1529_s13, %s1082_s25  ;;  %s1087_s11 = sshll.u32 %s1350_s3, 4  ;;  %s1088_s11 = int_to_ptr.vmem [resolvable:$false] %s1087_s11 }
  0x49   : > { %s1089_s18 = scalar_lea.vmem %s1088_s11, 8192  ;;  %p1090_p4 = scmp.lt.s32.totalorder %s1529_s13, %s1088_s11 }
  0x4a   : > { %p1085_p5 = pnand %p1083_p2, %p1069_p3  ;;  %p1091_p8 = scmp.lt.s32.totalorder %s1089_s18, %s1082_s25 }
  0x4c   : > { %p1086_p7 = pneg %p1085_p5  ;;  %p1092_p10 = por %p1091_p8, %p1090_p4 }
  0x4e   : > { %p1093_p13 = pnand %p1092_p10, %p1086_p7 }
  0x50   : > { %1096 = shalt.err (!%p1093_p13)
}
  0x51   : > { %s1351_s19 = smov 512   ;;  %s1352_s20 = smov 256  }
  0x52   : > { %s1353_s21 = smov 16   ;;  %s1571_s12 = sadd.s32 4294967295, %s1347_s15  }
  0x53   : > { %914 = dma.hbm_to_vmem [thread:$0]  (!%p1525_p12), %s1540_s22, 4096, %s1529_s13, %s1542_s5, %s1351_s19, %s1352_s20, %s1353_s21  }
  0x54   : > { %s756_s16 = sadd.s32 4294967294, %s1347_s15   ;;  %s47_s23 = ssub.s32 %s1343_s14, %s2062_s17 }
  0x55   : > { %p48_p4 = scmp.eq.s32.totalorder %s47_s23, 0  ;;  %s50_s24 = sadd.s32 1, %s1327_s10 }
  0x56   : > { %p57_p7 = scmp.ne.s32.totalorder %s1327_s10, %s1323_s9  ;;  %p63_p9 = scmp.ne.s32.totalorder %s1323_s9, %s1319_s8 }
  0x57   : > { %s1582_s27 = scalar_select %p48_p4, %s1327_s10, %s50_s24  }
  0x58   : > { %p1994_p11 = scmp.eq.s32.totalorder %s1347_s15, 0  ;;  %p1961_p3 = scmp.eq.s32.totalorder %s1571_s12, 0 }
  0x59   : > { %1993 = sst [smem:[#allocation36_spill]] %s1582_s27  ;;  %p173_p6 = scmp.eq.s32.totalorder %s1571_s12, 21 }
  0x5a   : > { %p1586_p12 = por %p1994_p11, %p57_p7  ;;  %p179_p0 = scmp.eq.s32.totalorder %s756_s16, 21 }
  0x5b   : > { %p1594_p2 = por %p1961_p3, %p63_p9  ;;  %p1997_p5 = scmp.ne.s32.totalorder %s1311_s0, %s1307_s6 }
  0x5c   : > { %p1607_p10 = por %p173_p6, %p57_p7  ;;  %p1611_p13 = por %p179_p0, %p63_p9 }
  0x5d   : > { %s1996_s13 = scalar_select %p1594_p2, 1, 0 }
  0x5e   : > { %p1603_p8 = por %p1997_p5, %p1961_p3  ;;  %s1616_s3 = sand.u32 1, %s1327_s10  }
  0x5f   : > { %s1999_s26 = scalar_select %p1607_p10, 1, 0 }
  0x60   : > { %s1998_s22 = scalar_select %p1603_p8, 1, 0 }
  0x61   : > { %s2000_s25 = scalar_select %p1611_p13, 1, 0 }
  0x62   : > { %s1960_s11 = sshll.u32 %s1343_s14, 7  ;;  %s1959_s18 = sshll.u32 %s1616_s3, 3 }
  0x63   : > { %2001 = sst [smem:[#allocation37_spill]] %s2000_s25  ;;  %s2002_s1 = sld [smem:[#allocation39_spill]] }
  0x64   : > { %s203_s21 = scalar_lea.vmem [#allocation5], %s1959_s18  ;;  %p2003_p4 = scmp.lt.s32.totalorder %s1347_s15, 22 }
  0x65   : > { %s210_s16 = sshll.u32 %s203_s21, 4  ;;  %s200_s24 = scalar_lea.sflag [#allocation6], %s1616_s3  ;;  %s1637_s16 = int_to_ptr.vmem [resolvable:$true] %s210_s16 }
  0x66   : > { %p1633_p7 = pnand %p2003_p4, %p1586_p12 }
  0x68   : > { %p1099_p11 = pneg %p1633_p7 }
  0x69   : > { %s1625_s20 = scalar_lea.hbm %s2002_s1, %s1960_s11  ;;  %s1102_s21 = scalar_lea.hbm %s2002_s1, 1408 }
  0x6a   : > { %s1097_s6 = scalar_lea.hbm %s1625_s20, 128  ;;  %p1103_p12 = scmp.lt.u32.totalorder %s1625_s20, %s2002_s1 }
  0x6b   : > { %p1098_p9 = scmp.ne.s32.totalorder %s1625_s20, %s1097_s6  ;;  %p1104_p5 = scmp.lt.u32.totalorder %s1102_s21, %s1097_s6 }
  0x6c   : > { %p1106_p3 = scmp.lt.u32.totalorder %s1097_s6, %s1625_s20 }
  0x6d   : > { %p1100_p6 = pnand %p1099_p11, %p1098_p9  ;;  %p1105_p4 = por %p1104_p5, %p1103_p12 }
  0x6f   : > { %p1101_p0 = pneg %p1100_p6  ;;  %p1107_p13 = por %p1106_p3, %p1105_p4 }
  0x71   : > { %p1108_p10 = pnand %p1107_p13, %p1101_p0 }
  0x73   : > { %1111 = shalt.err (!%p1108_p10)
}
  0x74   : > { %s1112_s2 = scalar_lea.vmem %s1637_s16, 128  ;;  %s1354_s19 = smov [#allocation5]  }
  0x75   : > { %p1113_p9 = scmp.ne.s32.totalorder %s1637_s16, %s1112_s2  ;;  %s1117_s30 = sshll.u32 %s1354_s19, 4  ;;  %s1118_s30 = int_to_ptr.vmem [resolvable:$false] %s1117_s30 }
  0x76   : > { %s1119_s11 = scalar_lea.vmem %s1118_s30, 256  ;;  %p1120_p2 = scmp.lt.s32.totalorder %s1637_s16, %s1118_s30 }
  0x77   : > { %p1115_p6 = pnand %p1113_p9, %p1099_p11  ;;  %p1121_p12 = scmp.lt.s32.totalorder %s1119_s11, %s1112_s2 }
  0x79   : > { %p1116_p8 = pneg %p1115_p6  ;;  %p1122_p5 = por %p1121_p12, %p1120_p2 }
  0x7b   : > { %p1123_p3 = pnand %p1122_p5, %p1116_p8 }
  0x7d   : > { %1126 = shalt.err (!%p1123_p3)
}
  0x7e   : > { %s2005_s18 = sld [smem:[#allocation26_spill]]  ;;  %s2006_s6 = sld [smem:[#allocation25_spill]] }
  0x7f   : > { %s2007_s21 = sld [smem:[#allocation24_spill]]  ;;  %s2008_s2 = sld [smem:[#allocation32_spill]] }
  0x80   : > { %909 = dma.hbm_to_vmem [thread:$0]  (!%p1633_p7), %s1625_s20, 128, %s1637_s16, %s200_s24  }
  0x81   : > { %p2009_p8 = scmp.eq.s32.totalorder %s1511_s28, 0  ;;  %p2011_p10 = scmp.eq.s32.totalorder %s1347_s15, 0 }
  0x82   : > { %p2012_p4 = scmp.eq.s32.totalorder %s1571_s12, 0  ;;  %p2014_p6 = scmp.lt.s32.totalorder %s1347_s15, 22 }
  0x83   : > { %s2019_s10 = sld [smem:[#allocation42_spill]]  ;;  %s2021_s7 = sshll.u32 %s1616_s3, 3 }
  0x84   : > { %s110_s19 = sadd.s32 1, %s2005_s18  ;;  %p117_p2 = scmp.ne.s32.totalorder %s2005_s18, %s2006_s6 }
  0x85   : > { %s1671_s30 = scalar_select %p2009_p8, %s2005_s18, %s110_s19  }
  0x86   : > { %p119_p13 = por %p117_p2, %p2011_p10  ;;  %p123_p0 = scmp.ne.s32.totalorder %s2006_s6, %s2007_s21 }
  0x87   : > { %2010 = sst [smem:[#allocation38_spill]] %s1671_s30  ;;  %s243_s11 = sand.u32 1, %s2005_s18  }
  0x88   : > { %p1680_p9 = por %p123_p0, %p2012_p4  ;;  %s765_s17 = sshll.u32 %s243_s11, 7 }
  0x89   : > { %p1686_p12 = pnand %p2014_p6, %p119_p13  ;;  %p2016_p5 = pmov %p2014_p6 }
  0x8a   : > { %s2013_s1 = scalar_select %p1680_p9, 1, 0 }
  0x8b   : > { %s2015_s20 = scalar_select %p1686_p12, 1, 0 }
  0x8c   : > { %s896_s28 = scalar_select %p119_p13, [#allocation4], [#allocation15] }
  0x8d   : > { %s897_s16 = scalar_select %p119_p13, %s1343_s14, 0 }
  0x8e   : > { %s2068_s28 = smov (!%p2016_p5, %s896_s28), [#allocation17]  ;;  %p2017_p3 = pmov %p2016_p5 }
  0x8f   : > { %s766_s18 = sshll.u32 %s2008_s2, 4  ;;  %s245_s6 = scalar_lea.vmem [#allocation10], %s765_s17 }
  0x90   : > { %s2070_s16 = smov (!%p2017_p3, %s897_s16), 0  ;;  %s255_s21 = sshll.u32 %s245_s6, 4  ;;  %s1707_s21 = int_to_ptr.vmem [resolvable:$true] %s255_s21 }
  0x91   : > { %s1695_s24 = sld [smem:[%s2068_s28 + %s2070_s16]]  ;;  %s2018_s19 = sshll.u32 %s1343_s14, 7 }
  0x92   : > { %s2020_s25 = smov %s2019_s10  ;;  %s1703_s29 = scalar_lea.hbm %s2019_s10, %s2018_s19 }
  0x93   : > { %s269_s30 = scalar_lea.vmem [#allocation11], %s2021_s7  ;;  %s266_s28 = scalar_lea.sflag [#allocation12], %s1616_s3 }
  0x94   : > { %s276_s8 = sshll.u32 %s269_s30, 4  ;;  %s1127_s16 = scalar_lea.hbm %s1703_s29, 128  ;;  %s277_s8 = int_to_ptr.vmem [resolvable:$true] %s276_s8 }
  0x95   : > { %p1128_p2 = scmp.ne.s32.totalorder %s1703_s29, %s1127_s16  ;;  %s1132_s27 = scalar_lea.hbm %s2020_s25, 1408 }
  0x96   : > { %p1133_p13 = scmp.lt.u32.totalorder %s1703_s29, %s2020_s25  ;;  %p1134_p0 = scmp.lt.u32.totalorder %s1132_s27, %s1127_s16 }
  0x97   : > { %p1130_p8 = pnand %p1128_p2, %p1099_p11  ;;  %p1136_p6 = scmp.lt.u32.totalorder %s1127_s16, %s1703_s29 }
  0x98   : > { %p1135_p4 = por %p1134_p0, %p1133_p13 }
  0x99   : > { %p1131_p10 = pneg %p1130_p8 }
  0x9a   : > { %p1137_p5 = por %p1136_p6, %p1135_p4 }
  0x9c   : > { %p1138_p3 = pnand %p1137_p5, %p1131_p10 }
  0x9e   : > { %1141 = shalt.err (!%p1138_p3)
}
  0x9f   : > { %s1142_s7 = scalar_lea.vmem %s277_s8, 128  ;;  %s1355_s3 = smov [#allocation11]  }
  0xa0   : > { %p1143_p9 = scmp.ne.s32.totalorder %s277_s8, %s1142_s7  ;;  %s1147_s30 = sshll.u32 %s1355_s3, 4  ;;  %s1148_s30 = int_to_ptr.vmem [resolvable:$false] %s1147_s30 }
  0xa1   : > { %s1149_s11 = scalar_lea.vmem %s1148_s30, 256  ;;  %p1150_p1 = scmp.lt.s32.totalorder %s277_s8, %s1148_s30 }
  0xa2   : > { %p1145_p2 = pnand %p1143_p9, %p1099_p11  ;;  %p1151_p12 = scmp.lt.s32.totalorder %s1149_s11, %s1142_s7 }
  0xa4   : > { %p1146_p8 = pneg %p1145_p2  ;;  %p1152_p0 = por %p1151_p12, %p1150_p1 }
  0xa6   : > { %p1153_p13 = pnand %p1152_p0, %p1146_p8 }
  0xa8   : > { %1156 = shalt.err (!%p1153_p13)
}
  0xa9   : > { %922 = dma.hbm_to_vmem [thread:$0]  (!%p1633_p7), %s1703_s29, 128, %s277_s8, %s266_s28  }
  0xaa   : > { %s767_s16 = sshll.u32 %s1695_s24, 5  ;;  %s2022_s19 = sld [smem:[#allocation41_spill]] }
  0xab   : > { %s252_s17 = sadd.s32 %s767_s16, %s766_s18  ;;  %p2023_p11 = scmp.ne.s32.totalorder %s2015_s20, 0 }
  0xac   : > { %s768_s10 = sshll.u32 %s252_s17, 7 }
  0xad   : > { %p1159_p9 = pneg %p2023_p11 }
  0xb0   : > { %s1735_s3 = scalar_lea.hbm %s2022_s19, %s768_s10  ;;  %s1162_s2 = scalar_lea.hbm %s2022_s19, 32768 }
  0xb1   : > { %s1157_s23 = scalar_lea.hbm %s1735_s3, 2048  ;;  %p1163_p10 = scmp.lt.u32.totalorder %s1735_s3, %s2022_s19 }
  0xb2   : > { %p1158_p1 = scmp.ne.s32.totalorder %s1735_s3, %s1157_s23  ;;  %p1164_p4 = scmp.lt.u32.totalorder %s1162_s2, %s1157_s23 }
  0xb3   : > { %p1166_p5 = scmp.lt.u32.totalorder %s1157_s23, %s1735_s3 }
  0xb4   : > { %p1160_p7 = pnand %p1159_p9, %p1158_p1  ;;  %p1165_p6 = por %p1164_p4, %p1163_p10 }
  0xb6   : > { %p1161_p12 = pneg %p1160_p7  ;;  %p1167_p3 = por %p1166_p5, %p1165_p6 }
  0xb8   : > { %p1168_p2 = pnand %p1167_p3, %p1161_p12 }
  0xba   : > { %1171 = shalt.err (!%p1168_p2)
}
  0xbb   : > { %s1172_s28 = scalar_lea.vmem %s1707_s21, 2048  ;;  %s1356_s7 = smov [#allocation10]  }
  0xbc   : > { %p1173_p8 = scmp.ne.s32.totalorder %s1707_s21, %s1172_s28  ;;  %s1177_s30 = sshll.u32 %s1356_s7, 4  ;;  %s1178_s30 = int_to_ptr.vmem [resolvable:$false] %s1177_s30 }
  0xbd   : > { %s1179_s11 = scalar_lea.vmem %s1178_s30, 4096  ;;  %p1180_p1 = scmp.lt.s32.totalorder %s1707_s21, %s1178_s30 }
  0xbe   : > { %p1175_p0 = pnand %p1173_p8, %p1159_p9  ;;  %p1181_p7 = scmp.lt.s32.totalorder %s1179_s11, %s1172_s28 }
  0xc0   : > { %p1176_p13 = pneg %p1175_p0  ;;  %p1182_p10 = por %p1181_p7, %p1180_p1 }
  0xc2   : > { %p1183_p4 = pnand %p1182_p10, %p1176_p13 }
  0xc4   : > { %1186 = shalt.err (!%p1183_p4)
}
  0xc5   : > { %s1357_s16 = smov 128   ;;  %s1358_s17 = smov 8  }
  0xc6   : > { %919 = dma.hbm_to_vmem [thread:$0]  (!%p2023_p11), %s1735_s3, 2048, %s1707_s21, %s1542_s5, %s1357_s16, %s1357_s16, %s1358_s17  }
  0xc7   : > { %p2024_p9 = scmp.ne.s32.totalorder %s1991_s4, 0 }
  0xc8   : > { %s1766_s10 = sand.u32 (!%p2024_p9), 1, %s1323_s9   ;;  %p2025_p12 = scmp.ne.s32.totalorder (!%p2024_p9), %s1996_s13, 0 }
  0xc9   : > { %285 = sbr.rel (%p2024_p9) target bundleno = 771 (0x303), region = 36  ;;  %s1769_s27 = sshll.u32 (!%p2024_p9), %s1766_s10, 3 }
  0xca   : > { %s288_s6 = scalar_lea.sflag (!%p2024_p9), [#allocation6], %s1766_s10  ;;  %s291_s23 = scalar_lea.vmem (!%p2024_p9), [#allocation5], %s1769_s27 }
  0xd0   : > { %1274 = dma.done.wait (%p2025_p12), %s288_s6, 128  }
  0xd1   : > { %1276 = vsyncadd (%p2025_p12), %s288_s6, 4294967168  ;;  %s296_s4 = sand.u32 1, %s1571_s12   ;;  %s298_s5 = sand.u32 1, %s1311_s0  }
  0xd2   : > { %s773_s20 = sshll.u32 %s298_s5, 8  ;;  %s297_s21 = scalar_lea.sflag [#allocation9], %s296_s4 }
  0xd3   : > { %s1779_s3 = scalar_lea.vmem [#allocation8], %s773_s20  ;;  %p2026_p11 = scmp.ne.s32.totalorder %s1998_s22, 0 }
  0xd5   : > { %1278 = dma.done.wait (%p2026_p11), %s297_s21, 4096  }
  0xd6   : > { %1280 = vsyncadd (%p2026_p11), %s297_s21, 4294963200  ;;  %s2027_s29 = sld [smem:[#allocation25_spill]]  ;;  %p2028_p6 = scmp.ne.s32.totalorder %s2013_s1, 0 }
  0xdc   : > { %s307_s8 = sand.u32 1, %s2027_s29  }
  0xdd   : > { %s774_s2 = sshll.u32 %s307_s8, 7 }
  0xde   : > { %s1786_s24 = scalar_lea.vmem [#allocation10], %s774_s2 }
  0xdf   : > { %1282 = dma.done.wait (%p2028_p6), %s297_s21, 2048  }
  0xe0   : > { %1284 = vsyncadd (%p2028_p6), %s297_s21, 4294965248  ;;  %s315_s12 = scalar_lea.sflag [#allocation12], %s1766_s10  ;;  %s318_s18 = scalar_lea.vmem [#allocation11], %s1769_s27 }
  0xe1   : > { %1286 = dma.done.wait (%p2025_p12), %s315_s12, 128  }
  0xe2   : > { %1288 = vsyncadd (%p2025_p12), %s315_s12, 4294967168  ;;  %s357_s22 = scalar_lea.vmem [#allocation13], %s1769_s27  ;;  %s2029_s28 = sld [smem:[#allocation30_spill]] }
  0xe8   : > { %p777_p5 = scmp.ne.s32.totalorder %s2029_s28, 0 }
  0xe9   : > { %v1359_v0 = vmov (!%p777_p5), 0.0  }
  0xea   : > { %365 = sbr.rel (%p777_p5) target bundleno = 241 (0xf1), region = 56  ;;  %366 = vst [vmem:[#allocation2] sm:$0xff] (!%p777_p5), %v1359_v0 }
  0xf1 PF: > { %v369_v1 = vld [vmem:[%s1779_s3 + $0x8] sm:$0xff]  ;;  %v371_v2 = vld [vmem:[%s1779_s3 + $0x18] sm:$0xff]  ;;  %v368_v3 = vld [vmem:[%s1779_s3] sm:$0xff]  ;;  %v1360_v8 = vmov 0.0   ;;  %v1361_v9 = vmov 0.0|0.0   ;;  %vm1362_vm0 = vmmov 0  }
  0xf2   : > { %v836_v4 = vpack.c.bf16 %v371_v2, %v369_v1  ;;  %v370_v5 = vld [vmem:[%s1779_s3 + $0x10] sm:$0xff]  ;;  %v373_v6 = vld [vmem:[%s1779_s3 + $0x28] sm:$0xff]  ;;  %v375_v7 = vld [vmem:[%s1779_s3 + $0x38] sm:$0xff]  ;;  %464 = vmatprep.mubr.f32.mxu0 %v1360_v8  ;;  %868 = vmatprep.subr.bf16.mxu1 %v1361_v9  ;;  %s2030_s1 = sld [smem:[#allocation30_spill]] }
  0xf3   : > { %v838_v10 = vpack.c.bf16 %v370_v5, %v368_v3  ;;  %v840_v11 = vpack.c.bf16 %v375_v7, %v373_v6  ;;  %v372_v12 = vld [vmem:[%s1779_s3 + $0x20] sm:$0xff]  ;;  %v374_v13 = vld [vmem:[%s1779_s3 + $0x30] sm:$0xff]  ;;  %v377_v14 = vld [vmem:[%s1779_s3 + $0x48] sm:$0xff]  ;;  %833 = vmatprep.mubr.msk.f32.mxu1 %vm1362_vm0, %v1360_v8 }
  0xf4   : > { %837 = vmatprep.subr.bf16.mxu0 %v836_v4  ;;  %v379_v15 = vld [vmem:[%s1779_s3 + $0x58] sm:$0xff]  ;;  %v842_v16 = vpack.c.bf16 %v374_v13, %v372_v12  ;;  %v376_v18 = vld [vmem:[%s1779_s3 + $0x40] sm:$0xff]  ;;  %v378_v19 = vld [vmem:[%s1779_s3 + $0x50] sm:$0xff] }
  0xf5   : > { %839 = vmatpush1.bf16.msra.mxu0 %v838_v10  ;;  %v844_v17 = vpack.c.bf16 %v379_v15, %v377_v14  ;;  %v381_v20 = vld [vmem:[%s1779_s3 + $0x68] sm:$0xff]  ;;  %v383_v21 = vld [vmem:[%s1779_s3 + $0x78] sm:$0xff]  ;;  %v846_v22 = vpack.c.bf16 %v378_v19, %v376_v18  ;;  %v380_v24 = vld [vmem:[%s1779_s3 + $0x60] sm:$0xff] }
  0xf6   : > { %841 = vmatprep.subr.bf16.mxu0 %v840_v11  ;;  %v848_v23 = vpack.c.bf16 %v383_v21, %v381_v20  ;;  %v382_v25 = vld [vmem:[%s1779_s3 + $0x70] sm:$0xff]  ;;  %v385_v26 = vld [vmem:[%s1779_s3 + $0x88] sm:$0xff]  ;;  %v387_v27 = vld [vmem:[%s1779_s3 + $0x98] sm:$0xff] }
  0xf7   : > { %v850_v28 = vpack.c.bf16 %v382_v25, %v380_v24  ;;  %v852_v29 = vpack.c.bf16 %v387_v27, %v385_v26  ;;  %v384_v30 = vld [vmem:[%s1779_s3 + $0x80] sm:$0xff]  ;;  %v386_v31 = vld [vmem:[%s1779_s3 + $0x90] sm:$0xff]  ;;  %v389_v32 = vld [vmem:[%s1779_s3 + $0xa8] sm:$0xff] }
  0xf8   : > { %v391_v33 = vld [vmem:[%s1779_s3 + $0xb8] sm:$0xff]  ;;  %v854_v34 = vpack.c.bf16 %v386_v31, %v384_v30  ;;  %v388_v36 = vld [vmem:[%s1779_s3 + $0xa0] sm:$0xff]  ;;  %v390_v37 = vld [vmem:[%s1779_s3 + $0xb0] sm:$0xff]  ;;  %p779_p3 = scmp.ne.s32.totalorder %s2030_s1, 1 }
  0xf9   : > { %843 = vmatpush1.bf16.msra.mxu0 %v842_v16  ;;  %v856_v35 = vpack.c.bf16 %v391_v33, %v389_v32  ;;  %v393_v38 = vld [vmem:[%s1779_s3 + $0xc8] sm:$0xff]  ;;  %v395_v39 = vld [vmem:[%s1779_s3 + $0xd8] sm:$0xff]  ;;  %v858_v40 = vpack.c.bf16 %v390_v37, %v388_v36  ;;  %v392_v42 = vld [vmem:[%s1779_s3 + $0xc0] sm:$0xff]  ;;  %v1363_v25 = vmov (!%p779_p3), 0  }
  0xfa   : > { %845 = vmatprep.subr.bf16.mxu0 %v844_v17  ;;  %v860_v41 = vpack.c.bf16 %v395_v39, %v393_v38  ;;  %v394_v43 = vld [vmem:[%s1779_s3 + $0xd0] sm:$0xff]  ;;  %v397_v44 = vld [vmem:[%s1779_s3 + $0xe8] sm:$0xff]  ;;  %v399_v45 = vld [vmem:[%s1779_s3 + $0xf8] sm:$0xff]  ;;  %1056 = vset.pattern.permute.xlu0 (!%p779_p3), %v1363_v25 }
  0xfb   : > { %v862_v46 = vpack.c.bf16 %v394_v43, %v392_v42  ;;  %v864_v47 = vpack.c.bf16 %v399_v45, %v397_v44  ;;  %v396_v48 = vld [vmem:[%s1779_s3 + $0xe0] sm:$0xff]  ;;  %v398_v49 = vld [vmem:[%s1779_s3 + $0xf0] sm:$0xff]  ;;  %v481_v53 = vld [vmem:[%s1786_s24 + $0x8] sm:$0xff] }
  0xfc   : > { %v866_v50 = vpack.c.bf16 %v398_v49, %v396_v48  ;;  %v367_v51 = vld [vmem:[%s291_s23] sm:$0xff]  ;;  %v480_v52 = vld [vmem:[%s1786_s24] sm:$0xff]  ;;  %v485_v59 = vld [vmem:[%s1786_s24 + $0x28] sm:$0xff] }
  0xfd   : > { %847 = vmatpush1.bf16.msra.mxu0 %v846_v22  ;;  %v869_v54 = vpack.c.bf16 %v481_v53, %v480_v52  ;;  %v482_v55 = vld [vmem:[%s1786_s24 + $0x10] sm:$0xff]  ;;  %v483_v56 = vld [vmem:[%s1786_s24 + $0x18] sm:$0xff]  ;;  %v484_v58 = vld [vmem:[%s1786_s24 + $0x20] sm:$0xff] }
  0xfe   : > { %849 = vmatprep.subr.bf16.mxu0 %v848_v23  ;;  %v872_v57 = vpack.c.bf16 %v483_v56, %v482_v55  ;;  %v875_v60 = vpack.c.bf16 %v485_v59, %v484_v58  ;;  %v486_v61 = vld [vmem:[%s1786_s24 + $0x30] sm:$0xff]  ;;  %v487_v62 = vld [vmem:[%s1786_s24 + $0x38] sm:$0xff]  ;;  %v488_v0 = vld [vmem:[%s1786_s24 + $0x40] sm:$0xff] }
  0xff   : > { %870 = vmatpush3.bf16.msra.mxu1 %v869_v54  ;;  %v878_v63 = vpack.c.bf16 %v487_v62, %v486_v61  ;;  %v489_v1 = vld [vmem:[%s1786_s24 + $0x48] sm:$0xff]  ;;  %v490_v3 = vld [vmem:[%s1786_s24 + $0x50] sm:$0xff]  ;;  %v491_v4 = vld [vmem:[%s1786_s24 + $0x58] sm:$0xff] }
 0x100   : > { %871 = vmatprep.subr.bf16.mxu1 %v1361_v9  ;;  %v881_v2 = vpack.c.bf16 %v489_v1, %v488_v0  ;;  %v884_v5 = vpack.c.bf16 %v491_v4, %v490_v3  ;;  %v492_v6 = vld [vmem:[%s1786_s24 + $0x60] sm:$0xff]  ;;  %v493_v7 = vld [vmem:[%s1786_s24 + $0x68] sm:$0xff]  ;;  %v494_v11 = vld [vmem:[%s1786_s24 + $0x70] sm:$0xff] }
 0x101   : > { %851 = vmatpush1.bf16.msra.mxu0 %v850_v28  ;;  %v887_v10 = vpack.c.bf16 %v493_v7, %v492_v6  ;;  %v495_v12 = vld [vmem:[%s1786_s24 + $0x78] sm:$0xff]  ;;  %v479_v22 = vld [vmem:[#allocation2] sm:$0xff] }
 0x102   : > { %853 = vmatprep.subr.bf16.mxu0 %v852_v29  ;;  %v890_v13 = vpack.c.bf16 %v495_v12, %v494_v11  ;;  %v572_v8 = vld [vmem:[%s318_s18] sm:$0xff] (!%p779_p3) }
 0x103   : > { %873 = vmatpush3.bf16.msra.mxu1 %v872_v57  ;;  %vm573_vm1 = vcmp.gt.f32.partialorder (!%p779_p3), %v572_v8, 0.0  ;;  %577 = vperm.xlu0 (!%p779_p3), %1056, %v572_v8  }
 0x104   : > { %874 = vmatprep.subr.bf16.mxu1 %v1361_v9  ;;  %v581_v26 = vsel (!%p779_p3), %vm573_vm1, 1, %v1363_v25 }
 0x105   : > { %855 = vmatpush1.bf16.msra.mxu0 %v854_v34 }
 0x106   : > { %857 = vmatprep.subr.bf16.mxu0 %v856_v35 }
 0x107   : > { %876 = vmatpush3.bf16.msra.mxu1 %v875_v60  ;;  %583 = vperm.xlu0 (!%p779_p3), %1056, %v581_v26  }
 0x108   : > { %877 = vmatprep.subr.bf16.mxu1 %v1361_v9 }
 0x109   : > { %859 = vmatpush1.bf16.msra.mxu0 %v858_v40 }
 0x10a   : > { %861 = vmatprep.subr.bf16.mxu0 %v860_v41 }
 0x10b   : > { %879 = vmatpush3.bf16.msra.mxu1 %v878_v63 }
 0x10c   : > { %880 = vmatprep.subr.bf16.mxu1 %v1361_v9 }
 0x10d   : > { %863 = vmatpush1.bf16.msra.mxu0 %v862_v46 }
 0x10e   : > { %865 = vmatprep.subr.bf16.mxu0 %v864_v47 }
 0x10f   : > { %882 = vmatpush3.bf16.msra.mxu1 %v881_v2 }
 0x110   : > { %883 = vmatprep.subr.bf16.mxu1 %v1361_v9 }
 0x111   : > { %867 = vmatpush1.bf16.msra.mxu0 %v866_v50 }
 0x113   : > { %885 = vmatpush3.bf16.msra.mxu1 %v884_v5 }
 0x114   : > { %465 = vmatmul.mubr.f32.vlgmr.msra.gmra.mrb[0].mxu0 %v367_v51  ;;  %886 = vmatprep.subr.bf16.mxu1 %v1361_v9 }
 0x117   : > { %888 = vmatpush3.bf16.msra.mxu1 %v887_v10 }
 0x118   : > { %889 = vmatprep.subr.bf16.mxu1 %v1361_v9 }
 0x11b   : > { %891 = vmatpush3.bf16.msra.mxu1 %v890_v13 }
 0x182   : > { %v578_v27 = vpop.permute.xlu0 (!%p779_p3), %577 }
 0x186   : > { %v584_v30 = vpop.permute.xlu0 (!%p779_p3), %583 }
 0x187   : > { %vm585_vm2 = vcmp.eq.s32.totalorder (!%p779_p3), %v584_v30, 1 }
 0x1e7   : > { %v466_v14 = vpop.f32.mrb[0].mxu0 }
 0x1e8   : > { %v778_v15 = vmul.f32 -1.442695, %v466_v14  ;;  %v468_v16 = vpop.f32.mrb[1].mxu0 }
 0x1ea   : > { %1052 = vpow2.f32 %v778_v15 }
 0x1f4   : > { %v1053_v17 = vpop.eup %1052 }
 0x1f5   : > { %v474_v18 = vadd.f32 1.0, %v1053_v17 }
 0x1f7   : > { %1054 = vrcp.f32 %v474_v18 }
 0x201   : > { %v1055_v19 = vpop.eup %1054 }
 0x202   : > { %v477_v20 = vmul.f32 %v1055_v19, %v466_v14 }
 0x204   : > { %v478_v21 = vmul.f32 %v477_v20, %v468_v16 }
 0x206   : > { %834 = vmatmul.mubr.f32.vlgmr.msra.gmra.mrb[0].mxu1 %v478_v21 }
 0x2d6   : > { %571 = sbr.rel (%p779_p3) target bundleno = 744 (0x2e8), region = 60 }
 0x2d9   : > { %v562_v9 = vpop.f32.mrb[0].mxu1 }
 0x2da   : > { %v566_v23 = vadd.f32 %v562_v9, %v479_v22  ;;  %v835_v24 = vpop.f32.mrb[1].mxu1 }
 0x2dc   : > { %567 = vst [vmem:[#allocation2] sm:$0xff] %v566_v23 }
 0x2e3   : > { %v574_v28 = vld [vmem:[#allocation2] sm:$0xff] }
 0x2e4   : > { %v580_v29 = vmul.f32 %v578_v27, %v574_v28 }
 0x2e6   : > { %v586_v31 = vsel %vm585_vm2, %v580_v29, 0.0 }
 0x2e7   : > { %587 = vst [vmem:[%s357_s22] sm:$0xff] %v586_v31 }
 0x2e8 PF: > { %s2031_s13 = sld [smem:[#allocation31_spill]]  ;;  %s2032_s16 = sld [smem:[#allocation43_spill]] }
 0x2e9   : > { %s602_s6 = sshll.u32 %s357_s22, 4  ;;  %s589_s23 = scalar_lea.sflag [#allocation7], %s1766_s10  ;;  %s603_s6 = int_to_ptr.vmem [resolvable:$true] %s602_s6 }
 0x2ea   : > { %s1187_s4 = scalar_lea.vmem %s603_s6, 128  ;;  %p2033_p8 = scmp.ne.s32.totalorder %s1999_s26, 0 }
 0x2eb   : > { %p1188_p2 = scmp.ne.s32.totalorder %s603_s6, %s1187_s4  ;;  %s1364_s5 = smov [#allocation13]  }
 0x2ec   : > { %s1191_s20 = sshll.u32 %s1364_s5, 4  ;;  %s1192_s20 = int_to_ptr.vmem [resolvable:$false] %s1191_s20 }
 0x2ed   : > { %p1189_p0 = pnand %p1188_p2, %p2033_p8  ;;  %s1193_s21 = scalar_lea.vmem %s1192_s20, 256 }
 0x2ee   : > { %s781_s7 = sshll.u32 %s2031_s13, 7  ;;  %p1194_p1 = scmp.lt.s32.totalorder %s603_s6, %s1192_s20 }
 0x2ef   : > { %s1869_s17 = scalar_lea.hbm %s2032_s16, %s781_s7  ;;  %p1190_p13 = pneg %p1189_p0 }
 0x2f0   : > { %p1195_p7 = scmp.lt.s32.totalorder %s1193_s21, %s1187_s4 }
 0x2f2   : > { %p1196_p10 = por %p1195_p7, %p1194_p1 }
 0x2f4   : > { %p1197_p4 = pnand %p1196_p10, %p1190_p13 }
 0x2f6   : > { %1200 = shalt.err (!%p1197_p4)
}
 0x2f7   : > { %s1201_s10 = scalar_lea.hbm %s1869_s17, 128  ;;  %s1205_s29 = scalar_lea.hbm %s2032_s16, 1408 }
 0x2f8   : > { %p1202_p9 = scmp.ne.s32.totalorder %s1869_s17, %s1201_s10  ;;  %p1206_p6 = scmp.lt.u32.totalorder %s1869_s17, %s2032_s16 }
 0x2f9   : > { %p1207_p5 = scmp.lt.u32.totalorder %s1205_s29, %s1201_s10  ;;  %p1209_p2 = scmp.lt.u32.totalorder %s1201_s10, %s1869_s17 }
 0x2fa   : > { %p1203_p12 = pnand %p1202_p9, %p2033_p8 }
 0x2fb   : > { %p1208_p3 = por %p1207_p5, %p1206_p6 }
 0x2fc   : > { %p1204_p11 = pneg %p1203_p12 }
 0x2fd   : > { %p1210_p0 = por %p1209_p2, %p1208_p3 }
 0x2ff   : > { %p1211_p13 = pnand %p1210_p0, %p1204_p11 }
 0x301   : > { %1214 = shalt.err (!%p1211_p13)
}
 0x302   : > { %904 = dma.vmem_to_hbm [thread:$0]  (%p2033_p8), %s603_s6, 128, %s1869_s17, %s589_s23  }
 0x303 PF: > { %s2034_s24 = sld [smem:[#allocation28_spill]]  ;;  %s2035_s12 = sld [smem:[#allocation37_spill]] }
 0x304   : > { %p928_p1 = scmp.ge.s32.totalorder %s1347_s15, 2 }
 0x309   : > { %s614_s18 = sand.u32 1, %s2034_s24   ;;  %p2036_p7 = scmp.ne.s32.totalorder %s2035_s12, 0 }
 0x30a   : > { %s615_s22 = scalar_lea.sflag [#allocation7], %s614_s18 }
 0x30b   : > { %p924_p10 = pnand %p928_p1, %p2036_p7 }
 0x30d   : > { %1290 = dma.done.wait (!%p924_p10), %s615_s22, 128  }
 0x30e   : > { %1292 = vsyncadd (!%p924_p10), %s615_s22, 4294967168  ;;  %s31_s15 = sadd.s32 1, %s1347_s15   ;;  %s2038_s26 = sld [smem:[#allocation25_spill]] }
 0x30f   : > { %p1896_p4 = scmp.ge.s32.totalorder %s31_s15, 24   ;;  %s2039_s29 = sld [smem:[#allocation26_spill]] }
 0x310   : > { %s2040_s30 = sld [smem:[#allocation38_spill]]  ;;  %s2041_s1 = sld [smem:[#allocation27_spill]] }
 0x311   : > { %s2042_s7 = sld [smem:[#allocation35_spill]]  ;;  %s2043_s13 = sld [smem:[#allocation29_spill]] }
 0x312   : > { %s2044_s10 = sld [smem:[#allocation36_spill]]  ;;  %s2045_s11 = sld [smem:[#allocation32_spill]] }
 0x313   : > { %s2046_s17 = sld [smem:[#allocation33_spill]]  ;;  %s2047_s23 = sld [smem:[#allocation34_spill]] }
 0x314   : > { %s2049_s28 = smov %s2038_s26  ;;  %s2050_s6 = smov %s1311_s0 }
 0x315   : > { %s2052_s8 = smov %s1323_s9  ;;  %s2054_s12 = smov %s1343_s14 }
 0x316   : > { %s2051_s0 = smov %s2041_s1  ;;  %30 = sbr.rel (!%p1896_p4) target bundleno = 27 (0x1b), region = 126 }
 0x317   : > { %s2053_s9 = smov %s2043_s13 }
 0x319   : > { %s2055_s13 = smov %s2046_s17  ;;  %s2056_s14 = smov %s2047_s23 }
 0x31d   :  { %620 = vsyncpa [#allocation6], 1 }
 0x31e   :  { %622 = vsyncpa [#allocation6 + $0x1], 1 }
 0x31f   :  { %623 = vsyncpa [#allocation9], 1 }
 0x320   :  { %625 = vsyncpa [#allocation9 + $0x1], 1 }
 0x321   :  { %626 = vsyncpa [#allocation12], 1 }
 0x322   :  { %628 = vsyncpa [#allocation12 + $0x1], 1 }
 0x323   :  { %629 = vsyncpa [#allocation7], 1 }
 0x324   :  { %631 = vsyncpa [#allocation7 + $0x1], 1 }

</bundles_post_ra>
